<compile_context>
chip_gen: v7x
topology: tpu7x:2x2x1
jax: 0.10.0
libtpu: 0.0.40
codegen_flags: <defaults>
</compile_context>

<pallas_src>
import functools

import jax
import jax.numpy as jnp
from jax.experimental import pallas as pl
from jax.experimental.pallas import tpu as pltpu


def _round_up(x, m):
    return (x + m - 1) // m * m


def _vmem_capacity_bytes():
    """Generation-aware VMEM capacity; conservative fallback (v7x per-TC)."""
    try:
        info = pltpu.get_tpu_info()
        cap = getattr(info, "vmem_capacity_bytes", None)
        if cap:
            return int(cap)
    except Exception:
        pass
    return 64 << 20


def _group_bn_kernel(x_ref, gamma_ref, beta_ref, o_ref, *, eps, inv_n, inv_nm1):
    # x_ref:     (R, cpg, HW)  R (batch, group) rows
    # gamma_ref: (R, cpg)      per-channel affine params for the same rows
    # beta_ref:  (R, cpg)
    # Moments in f32, single pass: sum and sum-of-squares.
    xf = x_ref[...].astype(jnp.float32)
    s_c = jnp.sum(xf, axis=2, keepdims=True)            # (R, cpg, 1) lane reduce
    ss_c = jnp.sum(xf * xf, axis=2, keepdims=True)       # (R, cpg, 1)
    s = jnp.sum(s_c, axis=1, keepdims=True)              # (R, 1, 1)  sublane reduce
    ss = jnp.sum(ss_c, axis=1, keepdims=True)             # (R, 1, 1)

    mean = s * inv_n                                       # (R, 1, 1)
    # unbiased variance; clamp tiny negative from cancellation.
    var = jnp.maximum((ss - s * mean) * inv_nm1, 0.0)      # (R, 1, 1)
    # One exact reciprocal per group row (per-element work is just mul+add).
    inv_std = pl.reciprocal(jnp.sqrt(var) + eps, approx=False)

    # y = (x - mean) / (std + eps) * gamma + beta == x * scale + shift
    gamma = gamma_ref[...].astype(jnp.float32)[:, :, None]  # (R, cpg, 1)
    beta = beta_ref[...].astype(jnp.float32)[:, :, None]
    scale = gamma * inv_std
    shift = beta - mean * scale

    # Output pass in the input's native dtype (bf16 VALUs on v6e/v7x); the f32
    # tile is not kept live across both passes.
    x = x_ref[...]
    o_ref[...] = (x * scale.astype(x.dtype) + shift.astype(x.dtype)).astype(o_ref.dtype)


def group_batchnorm2d(x, gamma, beta, group_num=16, eps=1e-10):
    """Pallas implementation of GroupBatchnorm2d.forward.

    x:     (N, C, H, W)
    gamma: (C, 1, 1)
    beta:  (C, 1, 1)
    """
    N, C, H, W = x.shape
    G = group_num
    if C % G != 0:
        # TODO(synk): support groups that split a channel (torch only needs
        # C*H*W % G == 0); needs per-element channel indexing for the affine.
        raise NotImplementedError("group_batchnorm2d requires C % group_num == 0")
    cpg = C // G
    HW = H * W
    gsize = cpg * HW
    rows = N * G

    # (N*G, cpg, HW) row view: one row per (batch, group).  Free reshape.
    x_rows = x.reshape(rows, cpg, HW)

    # Tiny 2-D per-row affine params (N*C elements total) — avoids the
    # 128-lane padding that a (rows, cpg, 1) layout would incur in VMEM.
    gamma_rows = jnp.tile(gamma.reshape(G, cpg), (N, 1))   # (rows, cpg)
    beta_rows = jnp.tile(beta.reshape(G, cpg), (N, 1))

    itemsize = jnp.dtype(x.dtype).itemsize
    row_pad_elems = _round_up(cpg, 8) * _round_up(HW, 128)   # VMEM (8,128) tiling

    # Generation-aware VMEM budget: ~75% of capacity, minus margin for Mosaic
    # internal scratch + the (padded) double-buffered affine tiles.
    vmem_cap = _vmem_capacity_bytes()
    usable = int((vmem_cap * 3) // 4)
    # per-row bytes: in + out double-buffered (native dtype) + ~2 f32 temps.
    bytes_per_row = row_pad_elems * (4 * itemsize + 2 * 4)
    budget_rows = max(1, (usable - (4 << 20)) // bytes_per_row)

    # Row-tile size R: multiple of 8 (sublane tiling of the 2-D affine blocks)
    # unless rows itself is tiny, and at least 2 grid steps when rows >= 16 so
    # both v7x TensorCores get work under dimension_semantics=("parallel",).
    if rows <= 8:
        R = rows
    else:
        n_steps = max(2, pl.cdiv(rows, budget_rows))
        R = min(_round_up(pl.cdiv(rows, n_steps), 8), _round_up(rows, 8))
    grid = (pl.cdiv(rows, R),)
    # Tail blocks (rows % R != 0) read garbage rows but their writes are
    # masked, so valid rows are unaffected.
    # TODO(synk): if a single (cpg, HW) row exceeds the VMEM budget, add a
    # gsize-tiled reduction axis (sum/sum-sq accumulators) instead of growing R.
    # TODO(synk): for HW not a multiple of 128, a lane-dense (rows, cpg*HW)
    # output slab (when gsize % 128 == 0) would avoid masked vst.msk stores.

    kernel = functools.partial(
        _group_bn_kernel,
        eps=float(eps),
        inv_n=1.0 / gsize,
        # torch.std gives NaN for gsize == 1 (0/0); we guard the divisor and
        # produce a finite (huge) value instead.
        inv_nm1=1.0 / max(gsize - 1, 1),
    )

    out_rows = pl.pallas_call(
        kernel,
        out_shape=jax.ShapeDtypeStruct((rows, cpg, HW), x.dtype),
        grid=grid,
        in_specs=[
            pl.BlockSpec((R, cpg, HW), lambda i: (i, 0, 0)),
            pl.BlockSpec((R, cpg), lambda i: (i, 0)),
            pl.BlockSpec((R, cpg), lambda i: (i, 0)),
        ],
        out_specs=pl.BlockSpec((R, cpg, HW), lambda i: (i, 0, 0)),
        compiler_params=pltpu.CompilerParams(
            dimension_semantics=("parallel",),
            vmem_limit_bytes=usable,
        ),
    )(x_rows, gamma_rows, beta_rows)

    return out_rows.reshape(N, C, H, W)


def _reference(x, gamma, beta, group_num, eps):
    N, C, H, W = x.shape
    xf = x.reshape(N, group_num, -1).astype(jnp.float32)
    mean = jnp.mean(xf, axis=2, keepdims=True)
    var = jnp.sum((xf - mean) ** 2, axis=2, keepdims=True) / (xf.shape[2] - 1)
    std = jnp.sqrt(var)
    xn = ((xf - mean) / (std + eps)).reshape(N, C, H, W)
    return xn * gamma + beta


if __name__ == "__main__":
    key = jax.random.PRNGKey(0)
    kx, kg, kb = jax.random.split(key, 3)

    N, C, G = 2, 32, 8
    eps = 1e-10

    gamma = jax.random.normal(kg, (C, 1, 1), dtype=jnp.float32)
    beta = jax.random.normal(kb, (C, 1, 1), dtype=jnp.float32)

    # Lane-aligned (HW = 256) and lane-masked (HW = 196) spatial sizes; both
    # give rows = 16 -> R = 8 -> grid = (2,) (two balanced "parallel" steps).
    for (H, W) in [(16, 16), (14, 14)]:
        x = jax.random.normal(kx, (N, C, H, W), dtype=jnp.float32)
        out = group_batchnorm2d(x, gamma, beta, group_num=G, eps=eps)
        out = jax.block_until_ready(out)

        ref = _reference(x, gamma, beta, G, eps)
        assert out.shape == (N, C, H, W)
        max_err = float(jnp.max(jnp.abs(out - ref)))
        assert jnp.allclose(out, ref, atol=1e-5, rtol=1e-5), max_err

    print("KERNEL_OK")
</pallas_src>

<mosaic_0001>
module attributes {stable_mosaic.version = 11 : i64} {
  func.func @_group_bn_kernel(%arg0: i32, %arg1: memref<8x4x256xf32, #tpu.memory_space<vmem>>, %arg2: memref<8x4xf32, #tpu.memory_space<vmem>>, %arg3: memref<8x4xf32, #tpu.memory_space<vmem>>, %arg4: memref<8x4x256xf32, #tpu.memory_space<vmem>>) attributes {dimension_semantics = [#tpu.dimension_semantics<parallel>], iteration_bounds = array<i64: 2>, scalar_prefetch = 0 : i64, scratch_operands = 0 : i64, tpu.core_type = #tpu.core_type<tc>, window_params = [{transform_indices = @transform_0, window_bounds = array<i64: 8, 4, 256>}, {transform_indices = @transform_1, window_bounds = array<i64: 8, 4>}, {transform_indices = @transform_2, window_bounds = array<i64: 8, 4>}, {transform_indices = @transform_3, window_bounds = array<i64: 8, 4, 256>}]} {
    %c0 = arith.constant 0 : index
    %c0_0 = arith.constant 0 : index
    %c0_1 = arith.constant 0 : index
    %0 = vector.load %arg1[%c0, %c0_0, %c0_1] : memref<8x4x256xf32, #tpu.memory_space<vmem>>, vector<8x4x256xf32>
    %cst = arith.constant dense<0.000000e+00> : vector<8x4xf32>
    %1 = vector.multi_reduction <add>, %0, %cst [2] : vector<8x4x256xf32> to vector<8x4xf32>
    %2 = vector.shape_cast %1 : vector<8x4xf32> to vector<8x4x1xf32>
    %3 = arith.mulf %0, %0 : vector<8x4x256xf32>
    %cst_2 = arith.constant dense<0.000000e+00> : vector<8x4xf32>
    %4 = vector.multi_reduction <add>, %3, %cst_2 [2] : vector<8x4x256xf32> to vector<8x4xf32>
    %5 = vector.shape_cast %4 : vector<8x4xf32> to vector<8x4x1xf32>
    %cst_3 = arith.constant dense<0.000000e+00> : vector<8x1xf32>
    %6 = vector.multi_reduction <add>, %2, %cst_3 [1] : vector<8x4x1xf32> to vector<8x1xf32>
    %7 = vector.shape_cast %6 : vector<8x1xf32> to vector<8x1x1xf32>
    %cst_4 = arith.constant dense<0.000000e+00> : vector<8x1xf32>
    %8 = vector.multi_reduction <add>, %5, %cst_4 [1] : vector<8x4x1xf32> to vector<8x1xf32>
    %9 = vector.shape_cast %8 : vector<8x1xf32> to vector<8x1x1xf32>
    %cst_5 = arith.constant 9.765625E-4 : f32
    %10 = vector.broadcast %cst_5 : f32 to vector<8x1x1xf32>
    %11 = arith.mulf %7, %10 : vector<8x1x1xf32>
    %12 = arith.mulf %7, %11 : vector<8x1x1xf32>
    %13 = arith.subf %9, %12 : vector<8x1x1xf32>
    %cst_6 = arith.constant 9.77517105E-4 : f32
    %14 = vector.broadcast %cst_6 : f32 to vector<8x1x1xf32>
    %15 = arith.mulf %13, %14 : vector<8x1x1xf32>
    %cst_7 = arith.constant 0.000000e+00 : f32
    %16 = vector.broadcast %cst_7 : f32 to vector<8x1x1xf32>
    %17 = arith.maximumf %15, %16 : vector<8x1x1xf32>
    %18 = math.sqrt %17 : vector<8x1x1xf32>
    %cst_8 = arith.constant 1.000000e-10 : f32
    %19 = vector.broadcast %cst_8 : f32 to vector<8x1x1xf32>
    %20 = arith.addf %18, %19 : vector<8x1x1xf32>
    %21 = tpu.reciprocal %20 : vector<8x1x1xf32> -> vector<8x1x1xf32>
    %c0_9 = arith.constant 0 : index
    %c0_10 = arith.constant 0 : index
    %22 = vector.load %arg2[%c0_9, %c0_10] : memref<8x4xf32, #tpu.memory_space<vmem>>, vector<8x4xf32>
    %23 = vector.shape_cast %22 : vector<8x4xf32> to vector<8x4x1xf32>
    %c0_11 = arith.constant 0 : index
    %c0_12 = arith.constant 0 : index
    %24 = vector.load %arg3[%c0_11, %c0_12] : memref<8x4xf32, #tpu.memory_space<vmem>>, vector<8x4xf32>
    %25 = vector.shape_cast %24 : vector<8x4xf32> to vector<8x4x1xf32>
    %26 = vector.broadcast %21 : vector<8x1x1xf32> to vector<8x4x1xf32>
    %27 = arith.mulf %23, %26 : vector<8x4x1xf32>
    %28 = vector.broadcast %11 : vector<8x1x1xf32> to vector<8x4x1xf32>
    %29 = arith.mulf %28, %27 : vector<8x4x1xf32>
    %30 = arith.subf %25, %29 : vector<8x4x1xf32>
    %c0_13 = arith.constant 0 : index
    %c0_14 = arith.constant 0 : index
    %c0_15 = arith.constant 0 : index
    %31 = vector.load %arg1[%c0_13, %c0_14, %c0_15] : memref<8x4x256xf32, #tpu.memory_space<vmem>>, vector<8x4x256xf32>
    %32 = vector.broadcast %27 : vector<8x4x1xf32> to vector<8x4x256xf32>
    %33 = arith.mulf %31, %32 : vector<8x4x256xf32>
    %34 = vector.broadcast %30 : vector<8x4x1xf32> to vector<8x4x256xf32>
    %35 = arith.addf %33, %34 : vector<8x4x256xf32>
    %c0_16 = arith.constant 0 : index
    %c0_17 = arith.constant 0 : index
    %c0_18 = arith.constant 0 : index
    %36 = vector.load %arg4[%c0_16, %c0_17, %c0_18] : memref<8x4x256xf32, #tpu.memory_space<vmem>>, vector<8x4x256xf32>
    tpu.vector_store %arg4[%c0_16, %c0_17, %c0_18], %35 {strides = array<i32>} : memref<8x4x256xf32, #tpu.memory_space<vmem>>, vector<8x4x256xf32>,
    return
  }
  func.func @transform_0(%arg0: i32) -> (i32, i32, i32) {
    %c0_i32 = arith.constant 0 : i32
    %c0_i32_0 = arith.constant 0 : i32
    %c0_i32_1 = arith.constant 0 : i32
    return %arg0, %c0_i32, %c0_i32_0 : i32, i32, i32
  }
  func.func @transform_1(%arg0: i32) -> (i32, i32) {
    %c0_i32 = arith.constant 0 : i32
    %c0_i32_0 = arith.constant 0 : i32
    return %arg0, %c0_i32 : i32, i32
  }
  func.func @transform_2(%arg0: i32) -> (i32, i32) {
    %c0_i32 = arith.constant 0 : i32
    %c0_i32_0 = arith.constant 0 : i32
    return %arg0, %c0_i32 : i32, i32
  }
  func.func @transform_3(%arg0: i32) -> (i32, i32, i32) {
    %c0_i32 = arith.constant 0 : i32
    %c0_i32_0 = arith.constant 0 : i32
    %c0_i32_1 = arith.constant 0 : i32
    return %arg0, %c0_i32, %c0_i32_0 : i32, i32, i32
  }
}

</mosaic_0001>

<bundles_post_ra>
// kernel: tpu_custom_call.1
= control target key start
LH: loop header
LB: loop body
LE: loop exit
PB: predicated region body
PF: predicated region fallthrough
CT: control target
= control target key end

     0   :  { %8 = vsyncpa [#allocation3], 0  ;;  %s1706_s0 = inlined_call_operand.hbm [shape: f32[16,4,256], index: 0, kind: input, shape index: {}]   ;;  %s1707_s1 = inlined_call_operand.vmem [shape: f32[16,4], index: 1, kind: input, shape index: {}]   ;;  %s1708_s2 = inlined_call_operand.vmem [shape: f32[16,4], index: 2, kind: input, shape index: {}]   ;;  %s1709_s3 = inlined_call_operand.hbm [shape: f32[16,4,256], index: 3, kind: output, shape index: {}]  }
   0x1   :  { %10 = vsyncpa [#allocation3 + $0x1], 0 }
   0x2   :  { %11 = vsyncpa [#allocation4], 0 }
   0x3   :  { %13 = vsyncpa [#allocation4 + $0x1], 0  ;;  %s1251_s12 = smov 0   ;;  %s1253_s13 = smov 0  }
   0x4   :  { %s1255_s14 = smov 0   ;;  %s1257_s15 = smov 0  }
   0x5 LB: > { %s1272_s16 = sadd.s32 4294967295, %s1222_s15   ;;  %s1013_s17 = sadd.s32 4294967294, %s1222_s15   ;;  %s1222_s15 = sphi %s1257_s15, %s1722_s15   ;;  %s1218_s14 = sphi %s1255_s14, %s1721_s14   ;;  %s1214_s13 = sphi %s1253_s13, %s1720_s13   ;;  %s1210_s12 = sphi %s1251_s12, %s1719_s12  }
   0x6   : > { %s1276_s18 = sadd.s32 1, %s1222_s15   ;;  %s26_s19 = sadd.s32 1, %s1218_s14 }
   0x7   : > { %s23_s20 = ssub.s32 %s1222_s15, %s1276_s18  ;;  %p33_p0 = scmp.ne.s32.totalorder %s1218_s14, %s1214_s13 }
   0x8   : > { %p24_p1 = scmp.eq.s32.totalorder %s23_s20, 0  ;;  %p34_p2 = scmp.eq.s32.totalorder %s1222_s15, 0 }
   0x9   : > { %p39_p3 = scmp.ne.s32.totalorder %s1214_s13, %s1210_s12  ;;  %p40_p4 = scmp.eq.s32.totalorder %s1272_s16, 0 }
   0xa   : > { %s1288_s21 = scalar_select %p24_p1, %s1218_s14, %s26_s19  }
   0xb   : > { %p1290_p5 = por %p34_p2, %p33_p0  ;;  %p1294_p6 = por %p40_p4, %p39_p3 }
   0xc   : > { %p115_p7 = scmp.eq.s32.totalorder %s1272_s16, 1  ;;  %p121_p8 = scmp.eq.s32.totalorder %s1013_s17, 1 }
   0xd   : > { %p1047_p10 = scmp.lt.s32.totalorder %s1222_s15, 2  ;;  %s141_s26 = sand.u32 1, %s1218_s14  }
   0xe   : > { %p1301_p11 = por %p115_p7, %p33_p0  ;;  %p1305_p12 = por %p121_p8, %p39_p3 }
   0xf   : > { %s1032_s27 = sshll.u32 %s1222_s15, 10  ;;  %s1016_s28 = sshll.u32 %s141_s26, 6 }
  0x10   : > { %s1713_s24 = scalar_select %p1301_p11, 1, 0 }
  0x11   : > { %s1714_s25 = scalar_select %p1305_p12, 1, 0 }
  0x12   : > { %s1314_s4 = scalar_lea.hbm %s1706_s0, %s1032_s27  ;;  %s145_s5 = scalar_lea.vmem [#allocation2], %s1016_s28 }
  0x13   : > { %s153_s6 = sshll.u32 %s145_s5, 4  ;;  %p1318_p13 = pnand %p1047_p10, %p1290_p5  ;;  %s1322_s6 = int_to_ptr.vmem [resolvable:$true] %s153_s6 }
  0x14   : > { %s1324_s8 = scalar_lea.sflag [#allocation3], %s141_s26  ;;  %s1126_s9 = scalar_lea.hbm %s1314_s4, 1024 }
  0x15   : > { %p1127_p0 = scmp.ne.s32.totalorder %s1314_s4, %s1126_s9  ;;  %p1128_p1 = pneg %p1318_p13 }
  0x16   : > { %s1131_s17 = scalar_lea.hbm %s1706_s0, 2048  ;;  %p1132_p4 = scmp.lt.u32.totalorder %s1314_s4, %s1706_s0 }
  0x17   : > { %p1129_p2 = pnand %p1128_p1, %p1127_p0  ;;  %p1133_p5 = scmp.lt.u32.totalorder %s1131_s17, %s1126_s9 }
  0x18   : > { %p1135_p8 = scmp.lt.u32.totalorder %s1126_s9, %s1314_s4 }
  0x19   : > { %p1130_p3 = pneg %p1129_p2  ;;  %p1134_p7 = por %p1133_p5, %p1132_p4 }
  0x1b   : > { %p1136_p10 = por %p1135_p8, %p1134_p7 }
  0x1d   : > { %p1137_p9 = pnand %p1136_p10, %p1130_p3 }
  0x1f   : > { %1140 = shalt.err (!%p1137_p9)
}
  0x20   : > { %s1141_s22 = scalar_lea.vmem %s1322_s6, 1024  ;;  %s1224_s26 = smov [#allocation2]  }
  0x21   : > { %p1142_p0 = scmp.ne.s32.totalorder %s1322_s6, %s1141_s22  ;;  %s1146_s27 = sshll.u32 %s1224_s26, 4  ;;  %s1147_s27 = int_to_ptr.vmem [resolvable:$false] %s1146_s27 }
  0x22   : > { %s1148_s28 = scalar_lea.vmem %s1147_s27, 2048  ;;  %p1149_p11 = scmp.lt.s32.totalorder %s1322_s6, %s1147_s27 }
  0x23   : > { %p1144_p2 = pnand %p1142_p0, %p1128_p1  ;;  %p1150_p4 = scmp.lt.s32.totalorder %s1148_s28, %s1141_s22 }
  0x25   : > { %p1145_p12 = pneg %p1144_p2  ;;  %p1151_p5 = por %p1150_p4, %p1149_p11 }
  0x27   : > { %p1152_p7 = pnand %p1151_p5, %p1145_p12 }
  0x29   : > { %1155 = shalt.err (!%p1152_p7)
}
  0x2a   : > { %s1225_s29 = smov 128   ;;  %s1226_s30 = smov 8  }
  0x2b   : > { %1042 = dma.hbm_to_vmem [thread:$0]  (!%p1318_p13), %s1314_s4, 1024, %s1322_s6, %s1324_s8, %s1225_s29, %s1225_s29, %s1226_s30  }
  0x2c   : > { %p1020_p9 = scmp.ge.s32.totalorder %s1222_s15, 1  ;;  %p175_p1 = scmp.lt.s32.totalorder %s1222_s15, 3 }
  0x2e   : > { %p176_p3 = pnand %p1020_p9, %p175_p1 }
  0x2f   : > { %s1355_s5 = sand.u32 (!%p176_p3), 1, %s1214_s13  }
  0x30   : > { %179 = sbr.rel (%p176_p3) target bundleno = 307 (0x133), region = 32  ;;  %s1021_s9 = sshll.u32 (!%p176_p3), %s1355_s5, 6 }
  0x31   : > { %s182_s10 = scalar_lea.sflag (!%p176_p3), [#allocation3], %s1355_s5  ;;  %s185_s11 = scalar_lea.vmem (!%p176_p3), [#allocation2], %s1021_s9 }
  0x37   : > { %1201 = dma.done.wait (%p1294_p6), %s182_s10, 1024  }
  0x38   : > { %1203 = vsyncadd (%p1294_p6), %s182_s10, 4294966272  ;;  %vm258_vm0 = vcmask 1043456   ;;  %v1365_v0 = vld [vmem:[%s185_s11 + $0x10] sm:$0xff]  ;;  %v1367_v1 = vld [vmem:[%s185_s11] sm:$0xff]  ;;  %p217_p6 = scmp.lt.s32.totalorder %s1272_s16, 1  ;;  %s1624_s22 = scalar_lea.vmem [#allocation5], %s1021_s9 }
  0x39   : > { %v1369_v2 = vld [vmem:[%s185_s11 + $0x18] sm:$0xff]  ;;  %v244_v3 = vcombine.high %v1365_v0, %v1365_v0  ;;  %v269_v4 = vsel %vm258_vm0, %v1365_v0, 0.0  ;;  %v242_v5 = vcombine.high %v1367_v1, %v1367_v1  ;;  %v259_v6 = vsel %vm258_vm0, %v1367_v1, 0.0  ;;  %v1379_v7 = vld [vmem:[%s185_s11 + $0x8] sm:$0xff]  ;;  %v1389_v12 = vld [vmem:[%s185_s11 + $0x20] sm:$0xff]  ;;  %s1034_s26 = sshll.u32 %s1272_s16, 10 }
  0x3a   : > { %v1381_v8 = vld [vmem:[%s185_s11 + $0x28] sm:$0xff]  ;;  %v245_v9 = vcombine.high %v1369_v2, %v1369_v2  ;;  %v274_v10 = vsel %vm258_vm0, %v1369_v2, 0.0  ;;  %v243_v11 = vcombine.high %v1379_v7, %v1379_v7  ;;  %v264_v15 = vsel %vm258_vm0, %v1379_v7, 0.0  ;;  %v1397_v17 = vld [vmem:[%s185_s11 + $0x38] sm:$0xff]  ;;  %v1401_v22 = vld [vmem:[%s185_s11 + $0x30] sm:$0xff]  ;;  %s218_s23 = scalar_select %p217_p6, %s1272_s16, 1 }
  0x3b   : > { %v270_v13 = vsel %vm258_vm0, %v244_v3, 0.0  ;;  %v260_v14 = vsel %vm258_vm0, %v242_v5, 0.0  ;;  %v247_v16 = vcombine.high %v1381_v8, %v1381_v8  ;;  %v284_v23 = vsel %vm258_vm0, %v1381_v8, 0.0  ;;  %s916_s27 = sshll.u32 %s1624_s22, 4  ;;  %s1658_s30 = scalar_lea.hbm %s1709_s3, %s1034_s26  ;;  %s1660_s27 = int_to_ptr.vmem [resolvable:$true] %s916_s27 }
  0x3c   : > { %v271_v18 = vadd.f32 %v270_v13, %v269_v4  ;;  %v261_v19 = vadd.f32 %v260_v14, %v259_v6  ;;  %v275_v20 = vsel %vm258_vm0, %v245_v9, 0.0  ;;  %v265_v21 = vsel %vm258_vm0, %v243_v11, 0.0  ;;  %s1023_s4 = sshll.u32 %s218_s23, 3  ;;  %s902_s16 = scalar_lea.sflag [#allocation4], %s1355_s5 }
  0x3d   : > { %v246_v24 = vcombine.high %v1389_v12, %v1389_v12  ;;  %v276_v25 = vadd.f32 %v275_v20, %v274_v10  ;;  %v266_v26 = vadd.f32 %v265_v21, %v264_v15  ;;  %v285_v27 = vsel %vm258_vm0, %v247_v16, 0.0  ;;  %s220_s8 = scalar_lea.vmem %s1707_s1, %s1023_s4  ;;  %s224_s20 = scalar_lea.vmem %s1708_s2, %s1023_s4 }
  0x3e   : > { %272 = vadd.xlane.f32.xlu1 %v271_v18  ;;  %262 = vadd.xlane.f32.xlu0 %v261_v19  ;;  %v249_v28 = vcombine.high %v1397_v17, %v1397_v17  ;;  %v279_v29 = vsel %vm258_vm0, %v1389_v12, 0.0  ;;  %v248_v31 = vcombine.high %v1401_v22, %v1401_v22  ;;  %v300_v32 = vmul.f32 %v1379_v7, %v1379_v7  ;;  %s1156_s9 = scalar_lea.vmem %s1660_s27, 1024  ;;  %p1716_p12 = scmp.ne.s32.totalorder %s1713_s24, 0 }
  0x3f   : > { %v280_v30 = vsel %vm258_vm0, %v246_v24, 0.0  ;;  %v299_v33 = vmul.f32 %v1367_v1, %v1367_v1  ;;  %v286_v34 = vadd.f32 %v285_v27, %v284_v23  ;;  %v294_v35 = vsel %vm258_vm0, %v1397_v17, 0.0  ;;  %v595_v27 = vld [vmem:[%s220_s8] sm:$0xff]  ;;  %p1157_p11 = scmp.ne.s32.totalorder %s1660_s27, %s1156_s9  ;;  %s1228_s10 = smov [#allocation5]  }
  0x40   : > { %v281_v36 = vadd.f32 %v280_v30, %v279_v29  ;;  %v295_v37 = vsel %vm258_vm0, %v249_v28, 0.0  ;;  %v316_v38 = vcombine.high %v300_v32, %v300_v32  ;;  %v302_v39 = vmul.f32 %v1369_v2, %v1369_v2  ;;  %s1160_s11 = sshll.u32 %s1228_s10, 4  ;;  %s1161_s11 = int_to_ptr.vmem [resolvable:$false] %s1160_s11 }
  0x41   : > { %v289_v40 = vsel %vm258_vm0, %v1401_v22, 0.0  ;;  %v290_v41 = vsel %vm258_vm0, %v248_v31, 0.0  ;;  %v315_v42 = vcombine.high %v299_v33, %v299_v33  ;;  %v301_v43 = vmul.f32 %v1365_v0, %v1365_v0  ;;  %p1158_p13 = pnand %p1157_p11, %p1716_p12  ;;  %s1162_s23 = scalar_lea.vmem %s1161_s11, 2048 }
  0x42   : > { %277 = vadd.xlane.f32.xlu1 %v276_v25  ;;  %267 = vadd.xlane.f32.xlu0 %v266_v26  ;;  %v296_v44 = vadd.f32 %v295_v37, %v294_v35  ;;  %v336_v45 = vsel %vm258_vm0, %v300_v32, 0.0  ;;  %v291_v46 = vadd.f32 %v290_v41, %v289_v40  ;;  %v337_v47 = vsel %vm258_vm0, %v316_v38, 0.0  ;;  %p1163_p10 = scmp.lt.s32.totalorder %s1660_s27, %s1161_s11  ;;  %p1164_p0 = scmp.lt.s32.totalorder %s1162_s23, %s1156_s9 }
  0x43   : > { %v318_v48 = vcombine.high %v302_v39, %v302_v39  ;;  %v304_v49 = vmul.f32 %v1381_v8, %v1381_v8  ;;  %v331_v50 = vsel %vm258_vm0, %v299_v33, 0.0  ;;  %v332_v51 = vsel %vm258_vm0, %v315_v42, 0.0  ;;  %v652_v42 = vld [vmem:[%s224_s20] sm:$0xff]  ;;  %p1159_p8 = pneg %p1158_p13 }
  0x44   : > { %v317_v52 = vcombine.high %v301_v43, %v301_v43  ;;  %v303_v53 = vmul.f32 %v1389_v12, %v1389_v12  ;;  %v338_v54 = vadd.f32 %v337_v47, %v336_v45  ;;  %v346_v55 = vsel %vm258_vm0, %v302_v39, 0.0  ;;  %p1165_p2 = por %p1164_p0, %p1163_p10 }
  0x45   : > { %v333_v56 = vadd.f32 %v332_v51, %v331_v50  ;;  %v347_v57 = vsel %vm258_vm0, %v318_v48, 0.0  ;;  %v341_v58 = vsel %vm258_vm0, %v301_v43, 0.0  ;;  %v320_v59 = vcombine.high %v304_v49, %v304_v49 }
  0x46   : > { %287 = vadd.xlane.f32.xlu1 %v286_v34  ;;  %282 = vadd.xlane.f32.xlu0 %v281_v36  ;;  %v342_v60 = vsel %vm258_vm0, %v317_v52, 0.0  ;;  %v319_v61 = vcombine.high %v303_v53, %v303_v53  ;;  %v306_v62 = vmul.f32 %v1397_v17, %v1397_v17  ;;  %v305_v63 = vmul.f32 %v1401_v22, %v1401_v22  ;;  %p1166_p4 = pnand %p1165_p2, %p1159_p8 }
  0x47   : > { %v348_v3 = vadd.f32 %v347_v57, %v346_v55  ;;  %v343_v4 = vadd.f32 %v342_v60, %v341_v58  ;;  %v356_v5 = vsel %vm258_vm0, %v304_v49, 0.0  ;;  %v351_v6 = vsel %vm258_vm0, %v303_v53, 0.0 }
  0x48   : > { %v357_v9 = vsel %vm258_vm0, %v320_v59, 0.0  ;;  %v352_v10 = vsel %vm258_vm0, %v319_v61, 0.0  ;;  %v322_v11 = vcombine.high %v306_v62, %v306_v62  ;;  %v321_v13 = vcombine.high %v305_v63, %v305_v63 }
  0x49   : > { %v358_v14 = vadd.f32 %v357_v9, %v356_v5  ;;  %v353_v15 = vadd.f32 %v352_v10, %v351_v6  ;;  %v366_v16 = vsel %vm258_vm0, %v306_v62, 0.0  ;;  %v361_v19 = vsel %vm258_vm0, %v305_v63, 0.0 }
  0x4a   : > { %297 = vadd.xlane.f32.xlu1 %v296_v44  ;;  %292 = vadd.xlane.f32.xlu0 %v291_v46  ;;  %v367_v18 = vsel %vm258_vm0, %v322_v11, 0.0  ;;  %v362_v20 = vsel %vm258_vm0, %v321_v13, 0.0  ;;  %v596_v24 = vlaneseq }
  0x4b   : > { %v368_v21 = vadd.f32 %v367_v18, %v366_v16  ;;  %v363_v23 = vadd.f32 %v362_v20, %v361_v19 }
  0x4c   : > { %v1455_v25 = vshrl.u32 %v596_v24, 7 }
  0x4e   : > { %339 = vadd.xlane.f32.xlu1 %v338_v54  ;;  %334 = vadd.xlane.f32.xlu0 %v333_v56  ;;  %v605_v26 = vsub.s32 1, %v1455_v25  ;;  %v612_v29 = vsub.s32 2, %v1455_v25  ;;  %v598_v30 = vsub.s32 0, %v1455_v25  ;;  %v619_v32 = vsub.s32 3, %v1455_v25 }
  0x4f   : > { %v626_v34 = vsub.s32 4, %v1455_v25  ;;  %v633_v36 = vsub.s32 5, %v1455_v25  ;;  %v640_v38 = vsub.s32 6, %v1455_v25  ;;  %v647_v40 = vsub.s32 7, %v1455_v25 }
  0x50   : > { %v606_v28 = vrot.slane %v595_v27, %v605_v26  ;;  %v613_v31 = vrot.slane %v595_v27, %v612_v29  ;;  %v599_v33 = vrot.slane %v595_v27, %v598_v30  ;;  %v620_v35 = vrot.slane %v595_v27, %v619_v32 }
  0x51   : > { %v627_v37 = vrot.slane %v595_v27, %v626_v34  ;;  %v634_v39 = vrot.slane %v595_v27, %v633_v36  ;;  %v641_v41 = vrot.slane %v595_v27, %v640_v38  ;;  %v648_v43 = vrot.slane %v595_v27, %v647_v40 }
  0x52   : > { %349 = vadd.xlane.f32.xlu1 %v348_v3  ;;  %344 = vadd.xlane.f32.xlu0 %v343_v4  ;;  %v656_v44 = vrot.slane %v652_v42, %v598_v30  ;;  %v663_v45 = vrot.slane %v652_v42, %v605_v26  ;;  %v670_v46 = vrot.slane %v652_v42, %v612_v29 }
  0x53   : > { %v677_v47 = vrot.slane %v652_v42, %v619_v32  ;;  %v684_v48 = vrot.slane %v652_v42, %v626_v34  ;;  %v691_v49 = vrot.slane %v652_v42, %v633_v36  ;;  %v698_v50 = vrot.slane %v652_v42, %v640_v38 }
  0x54   : > { %v705_v51 = vrot.slane %v652_v42, %v647_v40 }
  0x56   : > { %359 = vadd.xlane.f32.xlu1 %v358_v14  ;;  %354 = vadd.xlane.f32.xlu0 %v353_v15 }
  0x5a   : > { %369 = vadd.xlane.f32.xlu1 %v368_v21  ;;  %364 = vadd.xlane.f32.xlu0 %v363_v23 }
  0x6b   : > { %608 = vbcast.lane.b32.xlu1 %v606_v28, 256 }
  0x6f   : > { %615 = vbcast.lane.b32.xlu1 %v613_v31, 256 }
  0x70   : > { %601 = vbcast.lane.b32.xlu0 %v599_v33, 256 }
  0x73   : > { %622 = vbcast.lane.b32.xlu1 %v620_v35, 256 }
  0x74   : > { %629 = vbcast.lane.b32.xlu0 %v627_v37, 256 }
  0x77   : > { %636 = vbcast.lane.b32.xlu1 %v634_v39, 256 }
  0x78   : > { %643 = vbcast.lane.b32.xlu0 %v641_v41, 256 }
  0x7b   : > { %650 = vbcast.lane.b32.xlu1 %v648_v43, 256 }
  0x7c   : > { %658 = vbcast.lane.b32.xlu0 %v656_v44, 256 }
  0x7f   : > { %665 = vbcast.lane.b32.xlu1 %v663_v45, 256 }
  0x80   : > { %672 = vbcast.lane.b32.xlu0 %v670_v46, 256 }
  0x83   : > { %679 = vbcast.lane.b32.xlu1 %v677_v47, 256 }
  0x84   : > { %686 = vbcast.lane.b32.xlu0 %v684_v48, 256 }
  0x87   : > { %693 = vbcast.lane.b32.xlu1 %v691_v49, 256 }
  0x88   : > { %700 = vbcast.lane.b32.xlu0 %v698_v50, 256 }
  0x8b   : > { %707 = vbcast.lane.b32.xlu1 %v705_v51, 256 }
  0xcb   : > { %v273_v52 = vpop.xlane.xlu1 %272  ;;  %v263_v53 = vpop.xlane.xlu0 %262 }
  0xcc   : > { %v385_v54 = vsel %vm258_vm0, %v273_v52, 0.0  ;;  %v371_v55 = vsel %vm258_vm0, %v263_v53, 0.0 }
  0xcd   : > { %v386_v56 = vrot.slane %v385_v54, 4  ;;  %v372_v57 = vrot.slane %v371_v55, 4 }
  0xcf   : > { %v387_v58 = vadd.f32 %v386_v56, %v385_v54  ;;  %v373_v59 = vadd.f32 %v372_v57, %v371_v55  ;;  %v278_v60 = vpop.xlane.xlu1 %277  ;;  %v268_v61 = vpop.xlane.xlu0 %267 }
  0xd0   : > { %v392_v62 = vsel %vm258_vm0, %v278_v60, 0.0  ;;  %v378_v63 = vsel %vm258_vm0, %v268_v61, 0.0 }
  0xd1   : > { %v388_v3 = vrot.slane %v387_v58, 2  ;;  %v374_v4 = vrot.slane %v373_v59, 2  ;;  %v393_v5 = vrot.slane %v392_v62, 4  ;;  %v379_v6 = vrot.slane %v378_v63, 4 }
  0xd3   : > { %v389_v9 = vadd.f32 %v388_v3, %v387_v58  ;;  %v375_v10 = vadd.f32 %v374_v4, %v373_v59  ;;  %v394_v11 = vadd.f32 %v393_v5, %v392_v62  ;;  %v380_v13 = vadd.f32 %v379_v6, %v378_v63  ;;  %v288_v14 = vpop.xlane.xlu1 %287  ;;  %v283_v15 = vpop.xlane.xlu0 %282 }
  0xd4   : > { %v406_v16 = vsel %vm258_vm0, %v288_v14, 0.0  ;;  %v399_v18 = vsel %vm258_vm0, %v283_v15, 0.0 }
  0xd5   : > { %v390_v19 = vrot.slane %v389_v9, 1  ;;  %v376_v20 = vrot.slane %v375_v10, 1  ;;  %v395_v21 = vrot.slane %v394_v11, 2  ;;  %v381_v23 = vrot.slane %v380_v13, 2 }
  0xd6   : > { %v407_v24 = vrot.slane %v406_v16, 4  ;;  %v400_v26 = vrot.slane %v399_v18, 4 }
  0xd7   : > { %v396_v27 = vadd.f32 %v395_v21, %v394_v11  ;;  %v382_v28 = vadd.f32 %v381_v23, %v380_v13  ;;  %v298_v29 = vpop.xlane.xlu1 %297  ;;  %v293_v30 = vpop.xlane.xlu0 %292  ;;  %v391_v35 = vadd.f32 %v390_v19, %v389_v9  ;;  %v377_v36 = vadd.f32 %v376_v20, %v375_v10 }
  0xd8   : > { %v408_v31 = vadd.f32 %v407_v24, %v406_v16  ;;  %v401_v32 = vadd.f32 %v400_v26, %v399_v18  ;;  %v420_v33 = vsel %vm258_vm0, %v298_v29, 0.0  ;;  %v413_v34 = vsel %vm258_vm0, %v293_v30, 0.0 }
  0xd9   : > { %v397_v37 = vrot.slane %v396_v27, 1  ;;  %v383_v38 = vrot.slane %v382_v28, 1  ;;  %v421_v41 = vrot.slane %v420_v33, 4  ;;  %v414_v42 = vrot.slane %v413_v34, 4 }
  0xda   : > { %v409_v39 = vrot.slane %v408_v31, 2  ;;  %v402_v40 = vrot.slane %v401_v32, 2  ;;  %v1479_v51 = vmul.f32 0.0009765625, %v391_v35  ;;  %v1481_v52 = vmul.f32 0.0009765625, %v377_v36 }
  0xdb   : > { %v398_v43 = vadd.f32 %v397_v37, %v396_v27  ;;  %v384_v44 = vadd.f32 %v383_v38, %v382_v28  ;;  %v340_v45 = vpop.xlane.xlu1 %339  ;;  %v335_v46 = vpop.xlane.xlu0 %334  ;;  %v422_v49 = vadd.f32 %v421_v41, %v420_v33  ;;  %v415_v50 = vadd.f32 %v414_v42, %v413_v34 }
  0xdc   : > { %v410_v47 = vadd.f32 %v409_v39, %v408_v31  ;;  %v403_v48 = vadd.f32 %v402_v40, %v401_v32  ;;  %v434_v53 = vsel %vm258_vm0, %v340_v45, 0.0  ;;  %v427_v54 = vsel %vm258_vm0, %v335_v46, 0.0 }
  0xdd   : > { %v423_v57 = vrot.slane %v422_v49, 2  ;;  %v416_v58 = vrot.slane %v415_v50, 2  ;;  %v1485_v59 = vmul.f32 0.0009765625, %v398_v43  ;;  %v1487_v60 = vmul.f32 0.0009765625, %v384_v44 }
  0xde   : > { %v411_v55 = vrot.slane %v410_v47, 1  ;;  %v404_v56 = vrot.slane %v403_v48, 1  ;;  %v435_v61 = vrot.slane %v434_v53, 4  ;;  %v428_v62 = vrot.slane %v427_v54, 4 }
  0xdf   : > { %v350_v63 = vpop.xlane.xlu1 %349  ;;  %v345_v3 = vpop.xlane.xlu0 %344  ;;  %v424_v6 = vadd.f32 %v423_v57, %v422_v49  ;;  %v417_v9 = vadd.f32 %v416_v58, %v415_v50  ;;  %v1492_v15 = vmul.f32 %v1479_v51, %v391_v35  ;;  %v491_v16 = vmul.f32 %v1481_v52, %v377_v36 }
  0xe0   : > { %v412_v4 = vadd.f32 %v411_v55, %v410_v47  ;;  %v405_v5 = vadd.f32 %v404_v56, %v403_v48  ;;  %v436_v10 = vadd.f32 %v435_v61, %v434_v53  ;;  %v429_v11 = vadd.f32 %v428_v62, %v427_v54 }
  0xe1   : > { %v448_v13 = vsel %vm258_vm0, %v350_v63, 0.0  ;;  %v441_v14 = vsel %vm258_vm0, %v345_v3, 0.0  ;;  %v494_v28 = vmul.f32 %v1485_v59, %v398_v43  ;;  %v492_v29 = vmul.f32 %v1487_v60, %v384_v44 }
  0xe2   : > { %v1495_v18 = vmul.f32 0.0009765625, %v412_v4  ;;  %v1497_v19 = vmul.f32 0.0009765625, %v405_v5  ;;  %v437_v20 = vrot.slane %v436_v10, 2  ;;  %v430_v21 = vrot.slane %v429_v11, 2 }
  0xe3   : > { %v449_v23 = vrot.slane %v448_v13, 4  ;;  %v442_v24 = vrot.slane %v441_v14, 4  ;;  %v360_v26 = vpop.xlane.xlu1 %359  ;;  %v355_v27 = vpop.xlane.xlu0 %354  ;;  %v425_v30 = vrot.slane %v424_v6, 1  ;;  %v418_v31 = vrot.slane %v417_v9, 1 }
  0xe4   : > { %v438_v32 = vadd.f32 %v437_v20, %v436_v10  ;;  %v431_v33 = vadd.f32 %v430_v21, %v429_v11  ;;  %v1502_v36 = vmul.f32 %v1495_v18, %v412_v4  ;;  %v1505_v37 = vmul.f32 %v1497_v19, %v405_v5 }
  0xe5   : > { %v450_v34 = vadd.f32 %v449_v23, %v448_v13  ;;  %v443_v35 = vadd.f32 %v442_v24, %v441_v14  ;;  %v462_v38 = vsel %vm258_vm0, %v360_v26, 0.0  ;;  %v455_v39 = vsel %vm258_vm0, %v355_v27, 0.0 }
  0xe6   : > { %v439_v40 = vrot.slane %v438_v32, 1  ;;  %v432_v41 = vrot.slane %v431_v33, 1  ;;  %v426_v46 = vadd.f32 %v425_v30, %v424_v6  ;;  %v419_v47 = vadd.f32 %v418_v31, %v417_v9 }
  0xe7   : > { %v451_v42 = vrot.slane %v450_v34, 2  ;;  %v444_v43 = vrot.slane %v443_v35, 2  ;;  %v370_v44 = vpop.xlane.xlu1 %369  ;;  %v365_v45 = vpop.xlane.xlu0 %364  ;;  %v463_v48 = vrot.slane %v462_v38, 4  ;;  %v456_v49 = vrot.slane %v455_v39, 4 }
  0xe8   : > { %v440_v50 = vadd.f32 %v439_v40, %v438_v32  ;;  %v433_v53 = vadd.f32 %v432_v41, %v431_v33  ;;  %v476_v58 = vsel %vm258_vm0, %v370_v44, 0.0  ;;  %v469_v61 = vsel %vm258_vm0, %v365_v45, 0.0 }
  0xe9   : > { %v452_v54 = vadd.f32 %v451_v42, %v450_v34  ;;  %v445_v55 = vadd.f32 %v444_v43, %v443_v35  ;;  %v464_v56 = vadd.f32 %v463_v48, %v462_v38  ;;  %v457_v57 = vadd.f32 %v456_v49, %v455_v39 }
  0xea   : > { %v500_v62 = vsub.f32 %v440_v50, %v492_v29  ;;  %v499_v63 = vsub.f32 %v433_v53, %v491_v16  ;;  %v477_v10 = vrot.slane %v476_v58, 4  ;;  %v470_v11 = vrot.slane %v469_v61, 4 }
  0xeb   : > { %v453_v3 = vrot.slane %v452_v54, 1  ;;  %v446_v4 = vrot.slane %v445_v55, 1  ;;  %v1511_v5 = vpop.permute.xlu1 %608  ;;  %v465_v6 = vrot.slane %v464_v56, 2  ;;  %v458_v9 = vrot.slane %v457_v57, 2 }
  0xec   : > { %v508_v13 = vmul.f32 0.0009775171, %v500_v62  ;;  %v507_v14 = vmul.f32 0.0009775171, %v499_v63  ;;  %v478_v26 = vadd.f32 %v477_v10, %v476_v58  ;;  %v471_v27 = vadd.f32 %v470_v11, %v469_v61 }
  0xed   : > { %v454_v20 = vadd.f32 %v453_v3, %v452_v54  ;;  %v447_v21 = vadd.f32 %v446_v4, %v445_v55  ;;  %v466_v23 = vadd.f32 %v465_v6, %v464_v56  ;;  %v459_v24 = vadd.f32 %v458_v9, %v457_v57  ;;  %v1542_v4 = vpop.permute.xlu0 %601 }
  0xee   : > { %v1513_v30 = vmax.f32 %v508_v13, 0.0  ;;  %v1515_v29 = vmax.f32 %v507_v14, 0.0  ;;  %v479_v34 = vrot.slane %v478_v26, 2  ;;  %v472_v35 = vrot.slane %v471_v27, 2 }
  0xef   : > { %v502_v16 = vsub.f32 %v454_v20, %v494_v28  ;;  %v501_v31 = vsub.f32 %v447_v21, %v1492_v15  ;;  %v467_v32 = vrot.slane %v466_v23, 1  ;;  %v460_v33 = vrot.slane %v459_v24, 1  ;;  %v1521_v41 = vpop.permute.xlu1 %615 }
  0xf0   : > { %v1518_v38 = vmul.f32 0.0009765625, %v426_v46  ;;  %1094 = vrsqrt.f32 %v1513_v30  ;;  %v480_v44 = vadd.f32 %v479_v34, %v478_v26  ;;  %v1524_v28 = vmul.f32 0.0009765625, %v419_v47 }
  0xf1   : > { %v510_v39 = vmul.f32 0.0009775171, %v502_v16  ;;  %v509_v40 = vmul.f32 0.0009775171, %v501_v31  ;;  %1096 = vrsqrt.f32 %v1515_v29  ;;  %v468_v42 = vadd.f32 %v467_v32, %v466_v23  ;;  %v1561_v31 = vpop.permute.xlu0 %629 }
  0xf2   : > { %v461_v43 = vadd.f32 %v460_v33, %v459_v24  ;;  %v473_v48 = vadd.f32 %v472_v35, %v471_v27  ;;  %v481_v53 = vrot.slane %v480_v44, 1  ;;  %v498_v54 = vmul.f32 %v1518_v38, %v426_v46 }
  0xf3   : > { %v1526_v15 = vmax.f32 %v510_v39, 0.0  ;;  %v1528_v45 = vmax.f32 %v509_v40, 0.0  ;;  %v504_v49 = vsub.f32 %v468_v42, %v1502_v36  ;;  %v497_v61 = vmul.f32 %v1524_v28, %v419_v47  ;;  %v1536_v63 = vpop.permute.xlu1 %622 }
  0xf4   : > { %v503_v50 = vsub.f32 %v461_v43, %v1505_v37  ;;  %v474_v55 = vrot.slane %v473_v48, 1  ;;  %v482_v58 = vadd.f32 %v481_v53, %v480_v44  ;;  %v1227_v47 = vmov 839922192  }
  0xf5   : > { %1098 = vrsqrt.f32 %v1526_v15  ;;  %v512_v56 = vmul.f32 0.0009775171, %v504_v49  ;;  %v742_v13 = vunpack.c.l.s4 %v1227_v47  ;;  %vm532_vm1 = vcmp.eq.f32.partialorder %v1513_v30, inf }
  0xf6   : > { %1100 = vrsqrt.f32 %v1528_v45  ;;  %v511_v57 = vmul.f32 0.0009775171, %v503_v50  ;;  %v475_v62 = vadd.f32 %v474_v55, %v473_v48  ;;  %v506_v37 = vsub.f32 %v482_v58, %v498_v54  ;;  %v1578_v58 = vpop.permute.xlu0 %643 }
  0xf7   : > { %v1538_v3 = vmax.f32 %v512_v56, 0.0  ;;  %vm534_vm2 = vcmp.eq.f32.partialorder %v1513_v30, 0.0  ;;  %v535_v23 = vand.u32 2147483648, %v1513_v30  ;;  %v1555_v26 = vpop.permute.xlu1 %636  ;;  %vm525_vm3 = vcmp.eq.f32.partialorder %v1515_v29, inf }
  0xf8   : > { %v1540_v36 = vmax.f32 %v511_v57, 0.0  ;;  %v505_v46 = vsub.f32 %v475_v62, %v497_v61  ;;  %v514_v6 = vmul.f32 0.0009775171, %v506_v37  ;;  %v528_v16 = vand.u32 2147483648, %v1515_v29 }
  0xf9   : > { %1102 = vrsqrt.f32 %v1538_v3  ;;  %vm527_vm4 = vcmp.eq.f32.partialorder %v1515_v29, 0.0  ;;  %vm539_vm5 = vcmp.eq.f32.partialorder %v1528_v45, inf  ;;  %vm546_vm6 = vcmp.eq.f32.partialorder %v1526_v15, inf }
  0xfa   : > { %v1095_v9 = vpop.eup %1094  ;;  %1104 = vrsqrt.f32 %v1540_v36  ;;  %v513_v10 = vmul.f32 0.0009775171, %v505_v46  ;;  %v1546_v14 = vmax.f32 %v514_v6, 0.0  ;;  %v549_v43 = vand.u32 2147483648, %v1526_v15 }
  0xfb   : > { %v1097_v11 = vpop.eup %1096  ;;  %v531_v20 = vmul.f32 %v1095_v9, %v1513_v30  ;;  %v542_v48 = vand.u32 2147483648, %v1528_v45  ;;  %vm548_vm7 = vcmp.eq.f32.partialorder %v1526_v15, 0.0  ;;  %vm541_vm8 = vcmp.eq.f32.partialorder %v1528_v45, 0.0  ;;  %v1576_v53 = vpop.permute.xlu1 %650 }
  0xfc   : > { %v1550_v21 = vmax.f32 %v513_v10, 0.0  ;;  %v524_v24 = vmul.f32 %v1097_v11, %v1515_v29  ;;  %1106 = vrsqrt.f32 %v1546_v14  ;;  %v743_v55 = vunpack.c.0.s8 %v742_v13 }
  0xfd   : > { %v533_v27 = vsel %vm532_vm1, %v1513_v30, %v531_v20  ;;  %vm560_vm9 = vcmp.eq.f32.partialorder %v1538_v3, inf  ;;  %vm562_vm10 = vcmp.eq.f32.partialorder %v1538_v3, 0.0  ;;  %vm553_vm11 = vcmp.eq.f32.partialorder %v1540_v36, inf }
  0xfe   : > { %1108 = vrsqrt.f32 %v1550_v21  ;;  %v536_v33 = vsel %vm534_vm2, %v535_v23, %v533_v27  ;;  %v526_v34 = vsel %vm525_vm3, %v1515_v29, %v524_v24  ;;  %v556_v6 = vand.u32 2147483648, %v1540_v36 }
  0xff   : > { %v1099_v32 = vpop.eup %1098  ;;  %v580_v39 = vadd.f32 1e-10, %v536_v33  ;;  %v529_v40 = vsel %vm527_vm4, %v528_v16, %v526_v34  ;;  %v1589_v10 = vsub.s32 %v743_v55, %v1455_v25  ;;  %vm555_vm12 = vcmp.eq.f32.partialorder %v1540_v36, 0.0 }
 0x100   : > { %v1101_v35 = vpop.eup %1100  ;;  %v545_v30 = vmul.f32 %v1099_v32, %v1526_v15  ;;  %v579_v44 = vadd.f32 1e-10, %v529_v40  ;;  %vm574_vm13 = vcmp.eq.f32.partialorder %v1546_v14, inf  ;;  %vm576_vm14 = vcmp.eq.f32.partialorder %v1546_v14, 0.0  ;;  %v659_v32 = vpop.permute.xlu0 %658 }
 0x101   : > { %v538_v42 = vmul.f32 %v1101_v35, %v1528_v45  ;;  %1110 = vrcp.f32 %v580_v39  ;;  %v577_v16 = vand.u32 2147483648, %v1546_v14  ;;  %vm567_vm15 = vcmp.eq.f32.partialorder %v1550_v21, inf }
 0x102   : > { %v547_v49 = vsel %vm546_vm6, %v1526_v15, %v545_v30  ;;  %1112 = vrcp.f32 %v579_v44  ;;  %v563_v15 = vand.u32 2147483648, %v1538_v3  ;;  %vm569_vm0 = vcmp.eq.f32.partialorder %v1550_v21, 0.0 }
 0x103   : > { %v540_v29 = vsel %vm539_vm5, %v1528_v45, %v538_v42  ;;  %v550_v50 = vsel %vm548_vm7, %v549_v43, %v547_v49  ;;  %v1103_v54 = vpop.eup %1102 }
 0x104   : > { %v543_v56 = vsel %vm541_vm8, %v542_v48, %v540_v29  ;;  %v582_v57 = vadd.f32 1e-10, %v550_v50  ;;  %v1105_v61 = vpop.eup %1104  ;;  %v559_v37 = vmul.f32 %v1103_v54, %v1538_v3  ;;  %v673_v55 = vpop.permute.xlu0 %672 }
 0x105   : > { %v581_v62 = vadd.f32 1e-10, %v543_v56  ;;  %v552_v45 = vmul.f32 %v1105_v61, %v1540_v36 }
 0x106   : > { %1114 = vrcp.f32 %v582_v57  ;;  %v561_v46 = vsel %vm560_vm9, %v1538_v3, %v559_v37  ;;  %v1107_v9 = vpop.eup %1106  ;;  %v666_v3 = vpop.permute.xlu1 %665 }
 0x107   : > { %1116 = vrcp.f32 %v581_v62  ;;  %v564_v11 = vsel %vm562_vm10, %v563_v15, %v561_v46  ;;  %v554_v47 = vsel %vm553_vm11, %v1540_v36, %v552_v45  ;;  %v573_v24 = vmul.f32 %v1107_v9, %v1546_v14 }
 0x108   : > { %v1109_v13 = vpop.eup %1108  ;;  %v584_v20 = vadd.f32 1e-10, %v564_v11  ;;  %v557_v23 = vsel %vm555_vm12, %v556_v6, %v554_v47  ;;  %v570_v36 = vand.u32 2147483648, %v1550_v21 }
 0x109   : > { %v583_v27 = vadd.f32 1e-10, %v557_v23  ;;  %v566_v25 = vmul.f32 %v1109_v13, %v1550_v21  ;;  %v575_v33 = vsel %vm574_vm13, %v1546_v14, %v573_v24  ;;  %v687_v23 = vpop.permute.xlu0 %686 }
 0x10a   : > { %1118 = vrcp.f32 %v584_v20  ;;  %v578_v35 = vsel %vm576_vm14, %v577_v16, %v575_v33  ;;  %v680_v29 = vpop.permute.xlu1 %679 }
 0x10b   : > { %v1111_v34 = vpop.eup %1110  ;;  %1120 = vrcp.f32 %v583_v27  ;;  %v568_v39 = vsel %vm567_vm15, %v1550_v21, %v566_v25  ;;  %v586_v42 = vadd.f32 1e-10, %v578_v35 }
 0x10c   : > { %v1113_v30 = vpop.eup %1112  ;;  %v710_v40 = vmul.f32 %v1111_v34, %v1511_v5  ;;  %v571_v43 = vsel %vm569_vm0, %v570_v36, %v568_v39 }
 0x10d   : > { %v709_v44 = vmul.f32 %v1113_v30, %v1542_v4  ;;  %v585_v48 = vadd.f32 1e-10, %v571_v43  ;;  %1122 = vrcp.f32 %v586_v42 }
 0x10e   : > { %v754_v14 = vrot.slane %v710_v40, %v1589_v10  ;;  %v718_v49 = vmul.f32 %v710_v40, %v1487_v60  ;;  %v694_v11 = vpop.permute.xlu1 %693 }
 0x10f   : > { %v747_v54 = vrot.slane %v709_v44, %v1589_v10  ;;  %1124 = vrcp.f32 %v585_v48  ;;  %v717_v21 = vmul.f32 %v709_v44, %v1481_v52 }
 0x110   : > { %v1115_v50 = vpop.eup %1114  ;;  %v726_v57 = vsub.f32 %v666_v3, %v718_v49  ;;  %v806_v62 = vmul.f32 %v754_v14, %v1379_v7 }
 0x111   : > { %v1117_v56 = vpop.eup %1116  ;;  %v712_v5 = vmul.f32 %v1115_v50, %v1536_v63  ;;  %v725_v61 = vsub.f32 %v659_v32, %v717_v21  ;;  %v805_v52 = vmul.f32 %v747_v54, %v1367_v1 }
 0x112   : > { %v711_v4 = vmul.f32 %v1117_v56, %v1521_v41  ;;  %v834_v60 = vrot.slane %v726_v57, %v1589_v10  ;;  %v708_v39 = vpop.permute.xlu1 %707 }
 0x113   : > { %v768_v37 = vrot.slane %v712_v5, %v1589_v10  ;;  %v720_v15 = vmul.f32 %v712_v5, %v1485_v59  ;;  %v827_v46 = vrot.slane %v725_v61, %v1589_v10 }
 0x114   : > { %v761_v45 = vrot.slane %v711_v4, %v1589_v10  ;;  %v719_v63 = vmul.f32 %v711_v4, %v1479_v51  ;;  %v1119_v6 = vpop.eup %1118  ;;  %v886_v41 = vadd.f32 %v834_v60, %v806_v62 }
 0x115   : > { %v728_v9 = vsub.f32 %v680_v29, %v720_v15  ;;  %v1121_v7 = vpop.eup %1120  ;;  %v714_v47 = vmul.f32 %v1119_v6, %v1555_v26  ;;  %v885_v13 = vadd.f32 %v827_v46, %v805_v52  ;;  %v808_v59 = vmul.f32 %v768_v37, %v1369_v2 }
 0x116   : > { %v727_v20 = vsub.f32 %v673_v55, %v719_v63  ;;  %v713_v24 = vmul.f32 %v1121_v7, %v1561_v31  ;;  %894 = vst [vmem:[%s1624_s22 + $0x8] sm:$0xff] %v886_v41  ;;  %v807_v51 = vmul.f32 %v761_v45, %v1365_v0 }
 0x117   : > { %v848_v1 = vrot.slane %v728_v9, %v1589_v10  ;;  %v782_v26 = vrot.slane %v714_v47, %v1589_v10  ;;  %893 = vst [vmem:[%s1624_s22] sm:$0xff] %v885_v13  ;;  %v722_v2 = vmul.f32 %v714_v47, %v1495_v18  ;;  %v1123_v31 = vpop.eup %1122 }
 0x118   : > { %v841_v3 = vrot.slane %v727_v20, %v1589_v10  ;;  %v775_v27 = vrot.slane %v713_v24, %v1589_v10  ;;  %v721_v25 = vmul.f32 %v713_v24, %v1497_v19  ;;  %v716_v33 = vmul.f32 %v1123_v31, %v1576_v53  ;;  %v701_v53 = vpop.permute.xlu0 %700 }
 0x119   : > { %v888_v16 = vadd.f32 %v848_v1, %v808_v59  ;;  %v1125_v32 = vpop.eup %1124  ;;  %v730_v34 = vsub.f32 %v694_v11, %v722_v2  ;;  %v810_v18 = vmul.f32 %v782_v26, %v1381_v8 }
 0x11a   : > { %v887_v36 = vadd.f32 %v841_v3, %v807_v51  ;;  %v715_v0 = vmul.f32 %v1125_v32, %v1578_v58  ;;  %v729_v35 = vsub.f32 %v687_v23, %v721_v25  ;;  %v796_v30 = vrot.slane %v716_v33, %v1589_v10 }
 0x11b   : > { %896 = vst [vmem:[%s1624_s22 + $0x18] sm:$0xff] %v888_v16  ;;  %v862_v19 = vrot.slane %v730_v34, %v1589_v10  ;;  %v724_v40 = vmul.f32 %v716_v33, %v1518_v38  ;;  %v809_v42 = vmul.f32 %v775_v27, %v1389_v12 }
 0x11c   : > { %895 = vst [vmem:[%s1624_s22 + $0x10] sm:$0xff] %v887_v36  ;;  %v789_v58 = vrot.slane %v715_v0, %v1589_v10  ;;  %v855_v43 = vrot.slane %v729_v35, %v1589_v10  ;;  %v723_v44 = vmul.f32 %v715_v0, %v1524_v28  ;;  %v812_v38 = vmul.f32 %v796_v30, %v1397_v17 }
 0x11d   : > { %v890_v48 = vadd.f32 %v862_v19, %v810_v18  ;;  %v732_v8 = vsub.f32 %v708_v39, %v724_v40 }
 0x11e   : > { %v889_v14 = vadd.f32 %v855_v43, %v809_v42  ;;  %v731_v49 = vsub.f32 %v701_v53, %v723_v44  ;;  %v811_v29 = vmul.f32 %v789_v58, %v1401_v22 }
 0x11f   : > { %898 = vst [vmem:[%s1624_s22 + $0x28] sm:$0xff] %v890_v48  ;;  %v876_v12 = vrot.slane %v732_v8, %v1589_v10 }
 0x120   : > { %897 = vst [vmem:[%s1624_s22 + $0x20] sm:$0xff] %v889_v14  ;;  %v869_v28 = vrot.slane %v731_v49, %v1589_v10 }
 0x121   : > { %v892_v50 = vadd.f32 %v876_v12, %v812_v38 }
 0x122   : > { %v891_v17 = vadd.f32 %v869_v28, %v811_v29 }
 0x123   : > { %900 = vst [vmem:[%s1624_s22 + $0x38] sm:$0xff] %v892_v50 }
 0x124   : > { %899 = vst [vmem:[%s1624_s22 + $0x30] sm:$0xff] %v891_v17 }
 0x125   : > { %1169 = shalt.err (!%p1166_p4)
}
 0x126   : > { %s1170_s4 = scalar_lea.hbm %s1658_s30, 1024  ;;  %s1174_s8 = scalar_lea.hbm %s1709_s3, 2048 }
 0x127   : > { %p1171_p5 = scmp.ne.s32.totalorder %s1658_s30, %s1170_s4  ;;  %p1175_p1 = scmp.lt.u32.totalorder %s1658_s30, %s1709_s3 }
 0x128   : > { %p1176_p3 = scmp.lt.u32.totalorder %s1174_s8, %s1170_s4  ;;  %p1178_p11 = scmp.lt.u32.totalorder %s1170_s4, %s1658_s30 }
 0x129   : > { %p1172_p7 = pnand %p1171_p5, %p1716_p12 }
 0x12a   : > { %p1177_p6 = por %p1176_p3, %p1175_p1 }
 0x12b   : > { %p1173_p9 = pneg %p1172_p7 }
 0x12c   : > { %p1179_p13 = por %p1178_p11, %p1177_p6 }
 0x12e   : > { %p1180_p8 = pnand %p1179_p13, %p1173_p9 }
 0x130   : > { %1183 = shalt.err (!%p1180_p8)
}
 0x131   : > { %s1229_s20 = smov 128   ;;  %s1230_s22 = smov 8  }
 0x132   : > { %1037 = dma.vmem_to_hbm [thread:$0]  (%p1716_p12), %s1660_s27, 1024, %s1658_s30, %s902_s16, %s1229_s20, %s1229_s20, %s1230_s22  }
 0x133 PF: > { %s931_s26 = sand.u32 1, %s1210_s12   ;;  %p1717_p10 = scmp.ne.s32.totalorder %s1714_s25, 0 }
 0x134   : > { %p1718_p0 = scmp.ge.s32.totalorder %s1222_s15, 2  ;;  %s932_s28 = scalar_lea.sflag [#allocation4], %s931_s26 }
 0x136   : > { %p1044_p2 = pnand %p1718_p0, %p1717_p10 }
 0x138   : > { %1205 = dma.done.wait (!%p1044_p2), %s932_s28, 1024  }
 0x139   : > { %1207 = vsyncadd (!%p1044_p2), %s932_s28, 4294966272  ;;  %p16_p4 = scmp.ge.s32.totalorder %s1276_s18, 4   ;;  %s1719_s12 = smov %s1214_s13 }
 0x13a   : > { %s1720_s13 = smov %s1218_s14  ;;  %s1721_s14 = smov %s1288_s21 }
 0x13b   : > { %s1722_s15 = smov %s1276_s18  ;;  %18 = sbr.rel (!%p16_p4) target bundleno = 5 (0x5), region = 83 }
 0x142   :  { %937 = vsyncpa [#allocation3], 1 }
 0x143   :  { %939 = vsyncpa [#allocation3 + $0x1], 1 }
 0x144   :  { %940 = vsyncpa [#allocation4], 1 }
 0x145   :  { %942 = vsyncpa [#allocation4 + $0x1], 1 }

</bundles_post_ra>
